<compile_context>
chip_gen: v5e
topology: v5e:2x2
jax: 0.10.0
libtpu: 0.0.40
codegen_flags: <defaults>
</compile_context>

<pallas_src>
import jax
import jax.numpy as jnp
from jax.experimental import pallas as pl
from jax.experimental.pallas import tpu as pltpu


# ------------------------- packed-slab row layout ----------------------------
# rows   0:4   fused layer-1 weight  [4,128]   (wa1 in cols 0:64, wc1 in 64:128)
# rows   4:8   zero padding (sublane alignment)
# rows   8:136 fused layer-2 weight  [128,128] blockdiag(wa2, wc2)
# rows 136:264 fused layer-3 weight  [128,128] (wa3 -> cols 0:2, wc3 -> col 2)
# row  264     fused bias 1 [1,128],  row 265  fused bias 2,  row 266  fused bias 3
# rows 267:272 zero padding
_SLAB_ROWS = 272

# ------------------------- packed output column layout -----------------------
# cols 0:2  actor logits
# col  2    critic value
# cols 3:5  log-softmax(logits)
# cols 5:128 zeros


# ----------------------------- Pallas kernel --------------------------------

def _actor_critic_kernel(x_ref, slab_ref, out_ref):
  x = x_ref[...]                                    # [Bt, 4] f32

  w1 = slab_ref[0:4, :]                             # [4, 128]
  w2 = slab_ref[8:136, :]                           # [128, 128]
  w3 = slab_ref[136:264, :]                         # [128, 128]
  b1 = slab_ref[264:265, :]                         # [1, 128]
  b2 = slab_ref[265:266, :]
  b3 = slab_ref[266:267, :]

  # Fused actor+critic MLP: tanh is elementwise, so it applies to the packed
  # [h_actor | h_critic] hidden state exactly as in the unfused network.
  h = jnp.tanh(jnp.dot(x, w1, preferred_element_type=jnp.float32) + b1)
  h = jnp.tanh(jnp.dot(h, w2, preferred_element_type=jnp.float32) + b2)
  y = jnp.dot(h, w3, preferred_element_type=jnp.float32) + b3     # [Bt, 128]

  # log-softmax over the 2 action logits — elementwise on lane slices
  # (keeps work on VPU/EUP; no cross-lane XLU reduction).
  l0 = y[:, 0:1]
  l1 = y[:, 1:2]
  m = jnp.maximum(l0, l1)
  lse = m + jnp.log(jnp.exp(l0 - m) + jnp.exp(l1 - m))             # [Bt, 1]

  out_ref[...] = y                                  # lane-dense [Bt,128] store
  out_ref[:, 3:5] = y[:, 0:2] - lse                 # log-probs into cols 3:5


# ----------------------------- kernel wrapper --------------------------------

def _round_up(n, m):
  return ((n + m - 1) // m) * m


@jax.jit
def actor_critic_forward_pallas(x, slab):
  """Fused actor+critic forward.

  Args:
    x:    [B, 4] float32 observations.
    slab: [272, 128] float32 packed weights/biases (see pack_params).

  Returns:
    (logits [B, 2], logprobs [B, 2], value [B, 1])
  """
  B = x.shape[0]
  # Batch tile: multiple of 8 sublanes; cap at 512 rows (well within VMEM even
  # on v7x's 64 MiB — the weight slab is only ~136 KiB and stays resident).
  block_b = min(512, _round_up(B, 8))
  B_pad = _round_up(B, block_b)
  if B_pad != B:
    x = jnp.pad(x, ((0, B_pad - B), (0, 0)))

  out = pl.pallas_call(
      _actor_critic_kernel,
      out_shape=jax.ShapeDtypeStruct((B_pad, 128), jnp.float32),
      grid=(B_pad // block_b,),
      in_specs=[
          pl.BlockSpec((block_b, 4), lambda i: (i, 0)),     # obs tile
          pl.BlockSpec((_SLAB_ROWS, 128), lambda i: (0, 0)),  # resident weights
      ],
      out_specs=pl.BlockSpec((block_b, 128), lambda i: (i, 0)),
      compiler_params=pltpu.CompilerParams(
          dimension_semantics=("parallel",)),
  )(x, slab)

  logits = out[:B, 0:2]
  value = out[:B, 2:3]
  logprobs = out[:B, 3:5]
  return logits, logprobs, value


# ----------------------------- parameter init -------------------------------

def _linear_init(key, fan_in, fan_out):
  """PyTorch-style nn.Linear init; weight stored as [in, out] (transposed)."""
  kw, kb = jax.random.split(key)
  bound = 1.0 / jnp.sqrt(jnp.float32(fan_in))
  w = jax.random.uniform(kw, (fan_in, fan_out), jnp.float32, -bound, bound)
  b = jax.random.uniform(kb, (1, fan_out), jnp.float32, -bound, bound)
  return w, b


def init_params(key):
  keys = jax.random.split(key, 6)
  wa1, ba1 = _linear_init(keys[0], 4, 64)
  wa2, ba2 = _linear_init(keys[1], 64, 64)
  wa3, ba3 = _linear_init(keys[2], 64, 2)
  wc1, bc1 = _linear_init(keys[3], 4, 64)
  wc2, bc2 = _linear_init(keys[4], 64, 64)
  wc3, bc3 = _linear_init(keys[5], 64, 1)
  return dict(wa1=wa1, ba1=ba1, wa2=wa2, ba2=ba2, wa3=wa3, ba3=ba3,
              wc1=wc1, bc1=bc1, wc2=wc2, bc2=bc2, wc3=wc3, bc3=bc3)


def pack_params(p):
  """Packs all 12 weight/bias arrays into one [272, 128] f32 slab (done once)."""
  f32 = jnp.float32
  w1 = jnp.zeros((8, 128), f32)
  w1 = w1.at[0:4, 0:64].set(p["wa1"]).at[0:4, 64:128].set(p["wc1"])
  w2 = jnp.zeros((128, 128), f32)
  w2 = w2.at[0:64, 0:64].set(p["wa2"]).at[64:128, 64:128].set(p["wc2"])
  w3 = jnp.zeros((128, 128), f32)
  w3 = w3.at[0:64, 0:2].set(p["wa3"]).at[64:128, 2:3].set(p["wc3"])
  b = jnp.zeros((8, 128), f32)
  b = b.at[0, 0:64].set(p["ba1"][0]).at[0, 64:128].set(p["bc1"][0])
  b = b.at[1, 0:64].set(p["ba2"][0]).at[1, 64:128].set(p["bc2"][0])
  b = b.at[2, 0:2].set(p["ba3"][0]).at[2, 2:3].set(p["bc3"][0])
  slab = jnp.concatenate([w1, w2, w3, b], axis=0)   # [272, 128]
  assert slab.shape == (_SLAB_ROWS, 128)
  return slab


# ----------------------------- full forward ---------------------------------

def actor_critic_forward(x, slab, sample_key):
  """Mirrors ActorCritic.forward.

  Returns (action_logits, action_sample, action_log_prob, action_logprobs,
  value); `action_logprobs` ([B, 2] log-softmax) stands in for the Categorical
  distribution object (its `.logits` attribute).
  """
  logits, logprobs, value = actor_critic_forward_pallas(x, slab)
  # Categorical(logits=...).sample() / .log_prob(sample) in plain JAX glue.
  action_sample = jax.random.categorical(sample_key, logits, axis=-1)   # [B]
  action_log_prob = jnp.take_along_axis(
      logprobs, action_sample[:, None], axis=-1)[:, 0]                  # [B]
  return logits, action_sample, action_log_prob, logprobs, value


# ----------------------------- JAX reference ---------------------------------

def _reference_forward(x, p):
  h = jnp.tanh(x @ p["wa1"] + p["ba1"])
  h = jnp.tanh(h @ p["wa2"] + p["ba2"])
  logits = h @ p["wa3"] + p["ba3"]
  logprobs = jax.nn.log_softmax(logits, axis=-1)
  g = jnp.tanh(x @ p["wc1"] + p["bc1"])
  g = jnp.tanh(g @ p["wc2"] + p["bc2"])
  value = g @ p["wc3"] + p["bc3"]
  return logits, logprobs, value


if __name__ == "__main__":
  root = jax.random.PRNGKey(0)
  k_params, k_x, k_sample = jax.random.split(root, 3)

  params = init_params(k_params)
  slab = pack_params(params)

  B = 8
  x = jax.random.normal(k_x, (B, 4), jnp.float32)   # CartPole-style obs

  logits, action, log_prob, logprobs, value = actor_critic_forward(
      x, slab, k_sample)
  jax.block_until_ready((logits, action, log_prob, logprobs, value))

  # sanity check vs pure-JAX reference
  ref_logits, ref_logprobs, ref_value = _reference_forward(x, params)
  assert jnp.allclose(logits, ref_logits, atol=1e-4, rtol=1e-4)
  assert jnp.allclose(logprobs, ref_logprobs, atol=1e-4, rtol=1e-4)
  assert jnp.allclose(value, ref_value, atol=1e-4, rtol=1e-4)
  assert logits.shape == (B, 2)
  assert action.shape == (B,)
  assert log_prob.shape == (B,)
  assert value.shape == (B, 1)

  print("KERNEL_OK")
</pallas_src>

<mosaic_0001>
module attributes {stable_mosaic.version = 11 : i64} {
  func.func @_actor_critic_kernel(%arg0: i32, %arg1: memref<8x4xf32, #tpu.memory_space<vmem>>, %arg2: memref<272x128xf32, #tpu.memory_space<vmem>>, %arg3: memref<8x128xf32, #tpu.memory_space<vmem>>) attributes {dimension_semantics = [#tpu.dimension_semantics<parallel>], iteration_bounds = array<i64: 1>, scalar_prefetch = 0 : i64, scratch_operands = 0 : i64, tpu.core_type = #tpu.core_type<tc>, window_params = [{transform_indices = @transform_0, window_bounds = array<i64: 8, 4>}, {pipeline_mode = #tpu.pipeline_mode<synchronous>, transform_indices = @transform_1, window_bounds = array<i64: 272, 128>}, {transform_indices = @transform_2, window_bounds = array<i64: 8, 128>}]} {
    %c0 = arith.constant 0 : index
    %c0_0 = arith.constant 0 : index
    %0 = vector.load %arg1[%c0, %c0_0] : memref<8x4xf32, #tpu.memory_space<vmem>>, vector<8x4xf32>
    %c0_1 = arith.constant 0 : index
    %c0_2 = arith.constant 0 : index
    %1 = vector.load %arg2[%c0_1, %c0_2] : memref<272x128xf32, #tpu.memory_space<vmem>>, vector<4x128xf32>
    %c8 = arith.constant 8 : index
    %c0_3 = arith.constant 0 : index
    %2 = vector.load %arg2[%c8, %c0_3] : memref<272x128xf32, #tpu.memory_space<vmem>>, vector<128x128xf32>
    %c136 = arith.constant 136 : index
    %c0_4 = arith.constant 0 : index
    %3 = vector.load %arg2[%c136, %c0_4] : memref<272x128xf32, #tpu.memory_space<vmem>>, vector<128x128xf32>
    %c264 = arith.constant 264 : index
    %c0_5 = arith.constant 0 : index
    %4 = vector.load %arg2[%c264, %c0_5] : memref<272x128xf32, #tpu.memory_space<vmem>>, vector<1x128xf32>
    %c265 = arith.constant 265 : index
    %c0_6 = arith.constant 0 : index
    %5 = vector.load %arg2[%c265, %c0_6] : memref<272x128xf32, #tpu.memory_space<vmem>>, vector<1x128xf32>
    %c266 = arith.constant 266 : index
    %c0_7 = arith.constant 0 : index
    %6 = vector.load %arg2[%c266, %c0_7] : memref<272x128xf32, #tpu.memory_space<vmem>>, vector<1x128xf32>
    %cst = arith.constant dense<0.000000e+00> : vector<8x128xf32>
    %7 = tpu.matmul %0, %1, %cst {dimension_numbers = #tpu.dot_dimension_numbers<[1], [0], [0], [1], [0, 0, 1, 1], [], []>} : vector<8x4xf32>, vector<4x128xf32>, vector<8x128xf32> -> vector<8x128xf32>
    %8 = vector.broadcast %4 : vector<1x128xf32> to vector<8x128xf32>
    %9 = arith.addf %7, %8 : vector<8x128xf32>
    %10 = math.tanh %9 : vector<8x128xf32>
    %cst_8 = arith.constant dense<0.000000e+00> : vector<8x128xf32>
    %11 = tpu.matmul %10, %2, %cst_8 {dimension_numbers = #tpu.dot_dimension_numbers<[1], [0], [0], [1], [0, 0, 1, 1], [], []>} : vector<8x128xf32>, vector<128x128xf32>, vector<8x128xf32> -> vector<8x128xf32>
    %12 = vector.broadcast %5 : vector<1x128xf32> to vector<8x128xf32>
    %13 = arith.addf %11, %12 : vector<8x128xf32>
    %14 = math.tanh %13 : vector<8x128xf32>
    %cst_9 = arith.constant dense<0.000000e+00> : vector<8x128xf32>
    %15 = tpu.matmul %14, %3, %cst_9 {dimension_numbers = #tpu.dot_dimension_numbers<[1], [0], [0], [1], [0, 0, 1, 1], [], []>} : vector<8x128xf32>, vector<128x128xf32>, vector<8x128xf32> -> vector<8x128xf32>
    %16 = vector.broadcast %6 : vector<1x128xf32> to vector<8x128xf32>
    %17 = arith.addf %15, %16 : vector<8x128xf32>
    %18 = vector.extract_strided_slice %17 {offsets = [0, 0], sizes = [8, 1], strides = [1, 1]} : vector<8x128xf32> to vector<8x1xf32>
    %19 = vector.extract_strided_slice %17 {offsets = [0, 1], sizes = [8, 1], strides = [1, 1]} : vector<8x128xf32> to vector<8x1xf32>
    %20 = arith.maximumf %18, %19 : vector<8x1xf32>
    %21 = arith.subf %18, %20 : vector<8x1xf32>
    %22 = math.exp %21 : vector<8x1xf32>
    %23 = arith.subf %19, %20 : vector<8x1xf32>
    %24 = math.exp %23 : vector<8x1xf32>
    %25 = arith.addf %22, %24 : vector<8x1xf32>
    %26 = math.log %25 : vector<8x1xf32>
    %27 = arith.addf %20, %26 : vector<8x1xf32>
    %c0_10 = arith.constant 0 : index
    %c0_11 = arith.constant 0 : index
    %28 = vector.load %arg3[%c0_10, %c0_11] : memref<8x128xf32, #tpu.memory_space<vmem>>, vector<8x128xf32>
    tpu.vector_store %arg3[%c0_10, %c0_11], %17 {strides = array<i32>} : memref<8x128xf32, #tpu.memory_space<vmem>>, vector<8x128xf32>,
    %29 = vector.extract_strided_slice %17 {offsets = [0, 0], sizes = [8, 2], strides = [1, 1]} : vector<8x128xf32> to vector<8x2xf32>
    %30 = vector.broadcast %27 : vector<8x1xf32> to vector<8x2xf32>
    %31 = arith.subf %29, %30 : vector<8x2xf32>
    %c0_12 = arith.constant 0 : index
    %c3 = arith.constant 3 : index
    %32 = vector.load %arg3[%c0_12, %c3] : memref<8x128xf32, #tpu.memory_space<vmem>>, vector<8x2xf32>
    tpu.vector_store %arg3[%c0_12, %c3], %31 {strides = array<i32>} : memref<8x128xf32, #tpu.memory_space<vmem>>, vector<8x2xf32>,
    return
  }
  func.func @transform_0(%arg0: i32) -> (i32, i32) {
    %c0_i32 = arith.constant 0 : i32
    %c0_i32_0 = arith.constant 0 : i32
    return %arg0, %c0_i32 : i32, i32
  }
  func.func @transform_1(%arg0: i32) -> (i32, i32) {
    %c0_i32 = arith.constant 0 : i32
    %c0_i32_0 = arith.constant 0 : i32
    %c0_i32_1 = arith.constant 0 : i32
    return %c0_i32, %c0_i32_0 : i32, i32
  }
  func.func @transform_2(%arg0: i32) -> (i32, i32) {
    %c0_i32 = arith.constant 0 : i32
    %c0_i32_0 = arith.constant 0 : i32
    return %arg0, %c0_i32 : i32, i32
  }
}

</mosaic_0001>

<bundles_post_ra>
// kernel: actor_critic_forward_pallas.1
= control target key start
LH: loop header
LB: loop body
LE: loop exit
PB: predicated region body
PF: predicated region fallthrough
CT: control target
= control target key end

     0   :  { %7 = vsyncpa [#allocation3], 0  ;;  %s228_s12 = smov [#allocation2]   ;;  %s229_s14 = smov 128   ;;  %s262_s0 = inlined_call_operand.vmem [shape: f32[8,4], index: 0, kind: input, shape index: {}]   ;;  %s263_s1 = inlined_call_operand.hbm [shape: f32[272,128], index: 1, kind: input, shape index: {}]   ;;  %s264_s2 = inlined_call_operand.vmem [shape: f32[8,128], index: 2, kind: output, shape index: {}]  }
   0x1   :  { %s14_s11 = sshll.u32 %s263_s1, 4  ;;  %s16_s13 = sshll.u32 %s228_s12, 4  ;;  %s15_s11 = int_to_ptr.hbm [resolvable:$true] %s14_s11  ;;  %s17_s13 = int_to_ptr.vmem [resolvable:$true] %s16_s13 }
   0x2   :  { %s230_s15 = smov 8  }
   0x3   :  { %22 = dma.hbm_to_vmem [thread:$0]  %s15_s11, 4352, %s17_s13, [#allocation3], %s229_s14, %s229_s14, %s230_s15  }
   0x4   :  { %226 = dma.done.wait [#allocation3], 4352  }
   0x5   :  { %227 = vsyncadd [#allocation3], 4294962944  ;;  %vm69_vm0 = vcmask 1043456   ;;  %vm65_vm1 = vcmask 31744   ;;  %v28_v0 = vld [vmem:[#allocation2] sm:$0xf] }
   0x6   :  { %v27_v1 = vld [vmem:[%s262_s0] sm:$0xff]  ;;  %178 = vmatpush.msk.msra.mxu0 %vm69_vm0, %v28_v0  ;;  %v43_v3 = vld [vmem:[#allocation2 + $0x78] sm:$0xff]  ;;  %v42_v4 = vld [vmem:[#allocation2 + $0x70] sm:$0xff]  ;;  %s231_s18 = smov 127   ;;  %s232_s19 = smov 1   ;;  %v233_v51 = vmov 0  }
   0x7   :  { %v44_v2 = vld [vmem:[#allocation2 + $0x80] sm:$0xff]  ;;  %179 = vmatmul.msk.f32.vlgmr.msra.gmra.mxu0 %vm65_vm1, %v27_v1  ;;  %v41_v5 = vld [vmem:[#allocation2 + $0x68] sm:$0xff]  ;;  %v39_v7 = vld [vmem:[#allocation2 + $0x58] sm:$0xff]  ;;  %187 = vset.pattern.permute.xlu1 %v233_v51  ;;  %s234_s20 = smov 3   ;;  %vm171_vm2 = vcmask 39960  }
   0x8   :  { %95 = vmatpush.msra.mxu1 %v44_v2  ;;  %v40_v6 = vld [vmem:[#allocation2 + $0x60] sm:$0xff]  ;;  %v38_v8 = vld [vmem:[#allocation2 + $0x50] sm:$0xff]  ;;  %v37_v9 = vld [vmem:[#allocation2 + $0x48] sm:$0xff]  ;;  %188 = vset.pattern.permute.xlu0 %v233_v51 }
   0x9   :  { %v36_v10 = vld [vmem:[#allocation2 + $0x40] sm:$0xff]  ;;  %v35_v11 = vld [vmem:[#allocation2 + $0x38] sm:$0xff]  ;;  %v34_v12 = vld [vmem:[#allocation2 + $0x30] sm:$0xff] }
   0xa   :  { %96 = vmatpush.msra.mxu1 %v43_v3  ;;  %v33_v13 = vld [vmem:[#allocation2 + $0x28] sm:$0xff]  ;;  %v32_v14 = vld [vmem:[#allocation2 + $0x20] sm:$0xff]  ;;  %v31_v15 = vld [vmem:[#allocation2 + $0x18] sm:$0xff] }
   0xb   :  { %v30_v16 = vld [vmem:[#allocation2 + $0x10] sm:$0xff]  ;;  %v29_v17 = vld [vmem:[#allocation2 + $0x8] sm:$0xff]  ;;  %v60_v18 = vld [vmem:[#allocation2 + $0x100] sm:$0xff] }
   0xc   :  { %97 = vmatpush.msra.mxu1 %v42_v4  ;;  %v59_v19 = vld [vmem:[#allocation2 + $0xf8] sm:$0xff]  ;;  %117 = vmatpush.msra.mxu2 %v60_v18  ;;  %v58_v20 = vld [vmem:[#allocation2 + $0xf0] sm:$0xff]  ;;  %v57_v21 = vld [vmem:[#allocation2 + $0xe8] sm:$0xff] }
   0xd   :  { %v56_v22 = vld [vmem:[#allocation2 + $0xe0] sm:$0xff]  ;;  %v55_v23 = vld [vmem:[#allocation2 + $0xd8] sm:$0xff]  ;;  %v54_v24 = vld [vmem:[#allocation2 + $0xd0] sm:$0xff] }
   0xe   :  { %98 = vmatpush.msra.mxu1 %v41_v5  ;;  %118 = vmatpush.msra.mxu2 %v59_v19  ;;  %v53_v25 = vld [vmem:[#allocation2 + $0xc8] sm:$0xff]  ;;  %v52_v26 = vld [vmem:[#allocation2 + $0xc0] sm:$0xff]  ;;  %v51_v27 = vld [vmem:[#allocation2 + $0xb8] sm:$0xff] }
   0xf   :  { %v50_v28 = vld [vmem:[#allocation2 + $0xb0] sm:$0xff]  ;;  %v189_v29 = vld [vmem:[#allocation2 + $0x108] ss:$0 sm:$0xff]  ;;  %v48_v34 = vld [vmem:[#allocation2 + $0xa0] sm:$0xff] }
  0x10   :  { %99 = vmatpush.msra.mxu1 %v40_v6  ;;  %119 = vmatpush.msra.mxu2 %v58_v20  ;;  %v49_v33 = vld [vmem:[#allocation2 + $0xa8] sm:$0xff]  ;;  %v47_v35 = vld [vmem:[#allocation2 + $0x98] sm:$0xff]  ;;  %v46_v36 = vld [vmem:[#allocation2 + $0x90] sm:$0xff] }
  0x11   :  { %v45_v37 = vld [vmem:[#allocation2 + $0x88] sm:$0xff] }
  0x12   :  { %100 = vmatpush.msra.mxu1 %v39_v7  ;;  %120 = vmatpush.msra.mxu2 %v57_v21  ;;  %v190_v38 = vld [vmem:[#allocation2 + $0x109] ss:$0 sm:$0xff]  ;;  %v191_v42 = vld [vmem:[#allocation2 + $0x10a] ss:$0 sm:$0xff] }
  0x14   :  { %101 = vmatpush.msra.mxu1 %v38_v8  ;;  %121 = vmatpush.msra.mxu2 %v56_v22 }
  0x16   :  { %102 = vmatpush.msra.mxu1 %v37_v9  ;;  %122 = vmatpush.msra.mxu2 %v55_v23 }
  0x18   :  { %103 = vmatpush.msra.mxu1 %v36_v10  ;;  %123 = vmatpush.msra.mxu2 %v54_v24 }
  0x1a   :  { %104 = vmatpush.msra.mxu1 %v35_v11  ;;  %124 = vmatpush.msra.mxu2 %v53_v25 }
  0x1c   :  { %105 = vmatpush.msra.mxu1 %v34_v12  ;;  %125 = vmatpush.msra.mxu2 %v52_v26 }
  0x1e   :  { %106 = vmatpush.msra.mxu1 %v33_v13  ;;  %126 = vmatpush.msra.mxu2 %v51_v27 }
  0x20   :  { %107 = vmatpush.msra.mxu1 %v32_v14  ;;  %127 = vmatpush.msra.mxu2 %v50_v28 }
  0x22   :  { %108 = vmatpush.msra.mxu1 %v31_v15  ;;  %128 = vmatpush.msra.mxu2 %v49_v33 }
  0x24   :  { %109 = vmatpush.msra.mxu1 %v30_v16  ;;  %129 = vmatpush.msra.mxu2 %v48_v34 }
  0x26   :  { %110 = vmatpush.msra.mxu1 %v29_v17  ;;  %130 = vmatpush.msra.mxu2 %v47_v35 }
  0x28   :  { %131 = vmatpush.msra.mxu2 %v46_v36 }
  0x2a   :  { %132 = vmatpush.msra.mxu2 %v45_v37 }
  0x84   :  { %v90_v30 = vpop.f32.mrf.mxu0 }
  0x85   :  { %v91_v31 = vadd.f32 %v189_v29, %v90_v30 }
  0x87   :  { %192 = vtanh.f32 %v91_v31 }
  0x8d   :  { %v193_v32 = vpop.eup %192 }
  0x8e   :  { %111 = vmatmul.f32.vlgmr.msra.gmra.mxu1 %v193_v32 }
 0x10b   :  { %v112_v39 = vpop.f32.mrf.mxu1 }
 0x10c   :  { %v113_v40 = vadd.f32 %v190_v38, %v112_v39 }
 0x10e   :  { %194 = vtanh.f32 %v113_v40 }
 0x114   :  { %v195_v41 = vpop.eup %194 }
 0x115   :  { %133 = vmatmul.f32.vlgmr.msra.gmra.mxu2 %v195_v41 }
 0x198   :  { %v134_v43 = vpop.f32.mrf.mxu2 }
 0x199   :  { %v135_v44 = vadd.f32 %v191_v42, %v134_v43 }
 0x19b   :  { %160 = vst [vmem:[%s264_s2] sm:$0xff] %v135_v44  ;;  %138 = vrot.lane.b32.xlu0 %v135_v44, %s231_s18 }
 0x20d   :  { %v139_v45 = vpop.permute.xlu0 %138 }
 0x20e   :  { %v141_v46 = vmax.f32 %v135_v44, %v139_v45 }
 0x210   :  { %146 = vrot.lane.b32.xlu0 %v141_v46, %s232_s19  ;;  %v142_v52 = vsub.f32 %v135_v44, %v141_v46 }
 0x212   :  { %v143_v53 = vmul.f32 1.442695, %v142_v52 }
 0x282   :  { %v147_v47 = vpop.permute.xlu0 %146 }
 0x283   :  { %v149_v48 = vsub.f32 %v135_v44, %v147_v47 }
 0x285   :  { %v150_v49 = vmul.f32 1.442695, %v149_v48 }
 0x287   :  { %196 = vpow2.f32 %v150_v49 }
 0x288   :  { %198 = vpow2.f32 %v143_v53 }
 0x28d   :  { %v197_v50 = vpop.eup %196 }
 0x28e   :  { %153 = vrot.lane.b32.xlu1 %v197_v50, %s231_s18  ;;  %v199_v54 = vpop.eup %198 }
 0x300   :  { %v154_v55 = vpop.permute.xlu1 %153 }
 0x301   :  { %v156_v56 = vadd.f32 %v199_v54, %v154_v55 }
 0x303   :  { %200 = vlog2.f32 %v156_v56 }
 0x309   :  { %v201_v57 = vpop.eup %200 }
 0x30a   :  { %v158_v58 = vmul.f32 0.6931472, %v201_v57 }
 0x30c   :  { %v159_v59 = vadd.f32 %v158_v58, %v141_v46 }
 0x30e   :  { %163 = vperm.xlu1 %187, %v159_v59  }
 0x380   :  { %v164_v60 = vpop.permute.xlu1 %163 }
 0x381   :  { %v166_v61 = vsub.f32 %v135_v44, %v164_v60 }
 0x383   :  { %168 = vrot.lane.b32.xlu2 %v166_v61, %s234_s20 }
 0x3dd   :  { %v169_v62 = vpop.permute.xlu2 %168 }
 0x3de   :  { %172 = vst.msk [vmem:[%s264_s2] sm:$0xff] %vm171_vm2, %v169_v62 }
 0x3df   :  { %177 = vsyncpa [#allocation3], 1 }

</bundles_post_ra>
